<compile_context>
chip_gen: v7x
topology: tpu7x:2x2x1
jax: 0.10.0
libtpu: 0.0.40
codegen_flags: <defaults>
</compile_context>

<pallas_src>
import jax
import jax.numpy as jnp
from jax.experimental import pallas as pl
from jax.experimental.pallas import tpu as pltpu

_HP = jax.lax.Precision.HIGHEST  # exact f32 for wrapper-side folding / reference


def _round_up(n, m):
    return ((n + m - 1) // m) * m


# ----------------------------- kernel -----------------------------

def cls_sp_folded_kernel(x_ref, w_ref, b_ref, o_ref):
    # Single MXU matmul per batch tile: [tb, 64] @ [64, 230] + [1, 230].
    o_ref[...] = (
        jnp.dot(x_ref[...], w_ref[...], preferred_element_type=jnp.float32)
        + b_ref[...]
    ).astype(o_ref.dtype)


# ----------------------------- param prep -----------------------------

def fold_params(params):
    """Collapse the 3 activation-free linears into one (exact in real arithmetic)."""
    (w1, b1), (w2, b2), (w3, b3) = params
    w_eff = jnp.dot(jnp.dot(w1, w2, precision=_HP), w3, precision=_HP)            # [64, 230]
    b_eff = jnp.dot(jnp.dot(b1, w2, precision=_HP) + b2, w3, precision=_HP) + b3  # [230]
    return w_eff, b_eff.reshape(1, -1)


# ----------------------------- tiling -----------------------------

def _vmem_capacity_bytes():
    try:
        return int(getattr(pltpu.get_tpu_info(), "vmem_capacity_bytes", 64 << 20))
    except Exception:  # pragma: no cover - conservative (v7x-sized) fallback
        return 64 << 20


def _pick_tiling(batch, d_in, d_out, tile_b=None):
    """Pick (batch tile, n grid steps, vmem_limit_bytes) from the part's VMEM capacity."""
    cap = _vmem_capacity_bytes()
    # Scoped-VMEM ceiling: ~48 MiB on 64-MiB parts (v7x), ~96 MiB on 128-MiB parts (v5e/v6e).
    vmem_limit = min(int(cap * 3 // 4), 100 << 20)

    if tile_b is None:
        # f32, double-buffered x-tile + out-tile per row (~2.35 KB/row); weights are noise.
        per_row = 2 * 4 * (d_in + d_out)
        hard_cap = 16384 if cap >= (96 << 20) else 8192
        tile_b = max(256, min(hard_cap, ((vmem_limit // 2) // per_row) // 256 * 256))

    # Never tile larger than the (8-aligned) batch; keep the sublane dim a multiple of 8.
    tb = min(tile_b, max(8, _round_up(batch, 8)))
    tb = _round_up(tb, 8)
    n_steps = pl.cdiv(batch, tb)

    # v7x has 2 TensorCores: avoid a single-step grid for large batches so one TC isn't idle.
    if n_steps == 1 and batch >= 2048:
        tb = _round_up(pl.cdiv(batch, 2), 256)
        n_steps = pl.cdiv(batch, tb)
    return tb, n_steps, vmem_limit


# ----------------------------- forward -----------------------------

def cls_sp_forward(x, params, *, tile_b=None):
    """x: [B, features_dim] float32.  Returns [B, 230] float32 (== torch ClsSp.forward)."""
    B, D = x.shape
    w_eff, b_eff = fold_params(params)
    d_out = w_eff.shape[1]  # 230 (true width; no lane padding, no wrapper slice)

    tb, n_steps, vmem_limit = _pick_tiling(B, D, d_out, tile_b)

    return pl.pallas_call(
        cls_sp_folded_kernel,
        out_shape=jax.ShapeDtypeStruct((B, d_out), x.dtype),
        grid_spec=pltpu.PrefetchScalarGridSpec(
            num_scalar_prefetch=0,
            grid=(n_steps,),
            in_specs=[
                pl.BlockSpec((tb, D), lambda i: (i, 0)),      # x batch tile
                pl.BlockSpec((D, d_out), lambda i: (0, 0)),   # folded weight (whole, ~59 KB)
                pl.BlockSpec((1, d_out), lambda i: (0, 0)),   # folded bias
            ],
            out_specs=pl.BlockSpec((tb, d_out), lambda i: (i, 0)),
        ),
        compiler_params=pltpu.CompilerParams(
            dimension_semantics=("parallel",),   # batch tiles are independent (megacore)
            vmem_limit_bytes=vmem_limit,
        ),
        cost_estimate=pl.CostEstimate(
            flops=2 * B * D * d_out,
            transcendentals=0,
            bytes_accessed=4 * (B * D + D * d_out + d_out + B * d_out),
        ),
    )(x, w_eff, b_eff)


# ----------------------------- init / reference -----------------------------

def init_params(key, features_dim=64):
    """Mirror torch.nn.Linear: weight [out, in] stored transposed as [in, out], U(+/-1/sqrt(in))."""
    dims = [(features_dim, 128), (128, 256), (256, 230)]
    params = []
    for (din, dout) in dims:
        key, kw, kb = jax.random.split(key, 3)
        bound = 1.0 / jnp.sqrt(din)
        w = jax.random.uniform(kw, (din, dout), jnp.float32, -bound, bound)
        b = jax.random.uniform(kb, (dout,), jnp.float32, -bound, bound)
        params.append((w, b))
    return params


def cls_sp_reference(x, params):
    (w1, b1), (w2, b2), (w3, b3) = params
    h = jnp.dot(x, w1, precision=_HP) + b1
    h = jnp.dot(h, w2, precision=_HP) + b2
    return jnp.dot(h, w3, precision=_HP) + b3


if __name__ == "__main__":
    key = jax.random.PRNGKey(0)
    key, kx = jax.random.split(key)

    features_dim = 64
    params = init_params(key, features_dim)

    # Small batch (single clamped tile).
    x = jax.random.normal(kx, (8, features_dim), jnp.float32)
    ref = cls_sp_reference(x, params)
    out = jax.block_until_ready(cls_sp_forward(x, params))
    assert out.shape == (8, 230), out.shape
    assert jnp.allclose(out, ref, atol=2e-4, rtol=2e-4), float(jnp.max(jnp.abs(out - ref)))

    # Ragged batch, single-step grid (no wrapper pad/slice; last-tile clamping exercised).
    key, kx2 = jax.random.split(key)
    x2 = jax.random.normal(kx2, (300, features_dim), jnp.float32)
    ref2 = cls_sp_reference(x2, params)
    out2 = jax.block_until_ready(cls_sp_forward(x2, params))
    assert out2.shape == (300, 230), out2.shape
    assert jnp.allclose(out2, ref2, atol=2e-4, rtol=2e-4), float(jnp.max(jnp.abs(out2 - ref2)))

    # Multi-step grid with a ragged final tile (tile_b=2048 -> 3 steps for 4500 rows).
    key, kx3 = jax.random.split(key)
    x3 = jax.random.normal(kx3, (4500, features_dim), jnp.float32)
    ref3 = cls_sp_reference(x3, params)
    out3 = jax.block_until_ready(cls_sp_forward(x3, params, tile_b=2048))
    assert out3.shape == (4500, 230), out3.shape
    assert jnp.allclose(out3, ref3, atol=2e-4, rtol=2e-4), float(jnp.max(jnp.abs(out3 - ref3)))

    print("KERNEL_OK")
</pallas_src>

<mosaic_0001>
module attributes {stable_mosaic.version = 11 : i64} {
  func.func @cls_sp_folded_kernel(%arg0: i32, %arg1: memref<8x64xf32, #tpu.memory_space<vmem>>, %arg2: memref<64x230xf32, #tpu.memory_space<vmem>>, %arg3: memref<1x230xf32, #tpu.memory_space<vmem>>, %arg4: memref<8x230xf32, #tpu.memory_space<vmem>>) attributes {dimension_semantics = [#tpu.dimension_semantics<parallel>], iteration_bounds = array<i64: 1>, scalar_prefetch = 0 : i64, scratch_operands = 0 : i64, tpu.core_type = #tpu.core_type<tc>, window_params = [{transform_indices = @transform_0, window_bounds = array<i64: 8, 64>}, {pipeline_mode = #tpu.pipeline_mode<synchronous>, transform_indices = @transform_1, window_bounds = array<i64: 64, 230>}, {pipeline_mode = #tpu.pipeline_mode<synchronous>, transform_indices = @transform_2, window_bounds = array<i64: 1, 230>}, {transform_indices = @transform_3, window_bounds = array<i64: 8, 230>}]} {
    %c0 = arith.constant 0 : index
    %c0_0 = arith.constant 0 : index
    %0 = vector.load %arg1[%c0, %c0_0] : memref<8x64xf32, #tpu.memory_space<vmem>>, vector<8x64xf32>
    %c0_1 = arith.constant 0 : index
    %c0_2 = arith.constant 0 : index
    %1 = vector.load %arg2[%c0_1, %c0_2] : memref<64x230xf32, #tpu.memory_space<vmem>>, vector<64x230xf32>
    %cst = arith.constant dense<0.000000e+00> : vector<8x230xf32>
    %2 = tpu.matmul %0, %1, %cst {dimension_numbers = #tpu.dot_dimension_numbers<[1], [0], [0], [1], [0, 0, 1, 1], [], []>} : vector<8x64xf32>, vector<64x230xf32>, vector<8x230xf32> -> vector<8x230xf32>
    %c0_3 = arith.constant 0 : index
    %c0_4 = arith.constant 0 : index
    %3 = vector.load %arg3[%c0_3, %c0_4] : memref<1x230xf32, #tpu.memory_space<vmem>>, vector<1x230xf32>
    %4 = vector.broadcast %3 : vector<1x230xf32> to vector<8x230xf32>
    %5 = arith.addf %2, %4 : vector<8x230xf32>
    %c0_5 = arith.constant 0 : index
    %c0_6 = arith.constant 0 : index
    %6 = vector.load %arg4[%c0_5, %c0_6] : memref<8x230xf32, #tpu.memory_space<vmem>>, vector<8x230xf32>
    tpu.vector_store %arg4[%c0_5, %c0_6], %5 {strides = array<i32>} : memref<8x230xf32, #tpu.memory_space<vmem>>, vector<8x230xf32>,
    return
  }
  func.func @transform_0(%arg0: i32) -> (i32, i32) {
    %c0_i32 = arith.constant 0 : i32
    %c0_i32_0 = arith.constant 0 : i32
    return %arg0, %c0_i32 : i32, i32
  }
  func.func @transform_1(%arg0: i32) -> (i32, i32) {
    %c0_i32 = arith.constant 0 : i32
    %c0_i32_0 = arith.constant 0 : i32
    %c0_i32_1 = arith.constant 0 : i32
    return %c0_i32, %c0_i32_0 : i32, i32
  }
  func.func @transform_2(%arg0: i32) -> (i32, i32) {
    %c0_i32 = arith.constant 0 : i32
    %c0_i32_0 = arith.constant 0 : i32
    %c0_i32_1 = arith.constant 0 : i32
    return %c0_i32, %c0_i32_0 : i32, i32
  }
  func.func @transform_3(%arg0: i32) -> (i32, i32) {
    %c0_i32 = arith.constant 0 : i32
    %c0_i32_0 = arith.constant 0 : i32
    return %arg0, %c0_i32 : i32, i32
  }
}

</mosaic_0001>

<bundles_post_ra>
// kernel: tpu_custom_call.1
= control target key start
LH: loop header
LB: loop body
LE: loop exit
PB: predicated region body
PF: predicated region fallthrough
CT: control target
= control target key end

     0   :  { %8 = vsyncpa [#allocation3], 0  ;;  %s331_s0 = inlined_call_operand.hbm [shape: f32[8,64], index: 0, kind: input, shape index: {}]   ;;  %s332_s1 = inlined_call_operand.hbm [shape: f32[64,230], index: 1, kind: input, shape index: {}]   ;;  %s333_s2 = inlined_call_operand.vmem [shape: f32[1,230], index: 2, kind: input, shape index: {}]   ;;  %s334_s3 = inlined_call_operand.hbm [shape: f32[8,230], index: 3, kind: output, shape index: {}]  }
   0x1   :  { %9 = vsyncpa [#allocation6], 0 }
   0x2   :  { %10 = vsyncpa [#allocation4], 0  ;;  %s259_s12 = smov [#allocation2]   ;;  %s260_s14 = smov [#allocation5]  }
   0x3   :  { %s17_s13 = sshll.u32 %s259_s12, 4  ;;  %s26_s15 = sshll.u32 %s260_s14, 4  ;;  %s18_s13 = int_to_ptr.vmem [resolvable:$true] %s17_s13  ;;  %s285_s15 = int_to_ptr.vmem [resolvable:$true] %s26_s15 }
   0x4   :  { %s187_s18 = scalar_lea.hbm %s331_s0, 128 }
   0x5   :  { %p188_p0 = scmp.ne.s32.totalorder %s331_s0, %s187_s18  ;;  %p191_p1 = scmp.lt.u32.totalorder %s187_s18, %s331_s0 }
   0x7   :  { %p193_p2 = pnand %p191_p1, %p188_p0 }
   0x9   :  { %196 = shalt.err (!%p193_p2)
}
   0xa   :  { %s197_s23 = scalar_lea.vmem %s18_s13, 128  ;;  %p202_p4 = scmp.lt.s32.totalorder %s18_s13, %s18_s13 }
   0xb   :  { %p198_p3 = scmp.ne.s32.totalorder %s18_s13, %s197_s23  ;;  %p203_p5 = scmp.lt.s32.totalorder %s197_s23, %s197_s23 }
   0xd   :  { %p204_p6 = por %p203_p5, %p202_p4 }
   0xf   :  { %p205_p7 = pnand %p204_p6, %p198_p3 }
  0x11   :  { %208 = shalt.err (!%p205_p7)
}
  0x12   :  { %20 = dma.hbm_to_vmem [thread:$0]  %s331_s0, 128, %s18_s13, [#allocation3]  }
  0x13   :  { %s209_s28 = scalar_lea.hbm %s332_s1, 2048 }
  0x14   :  { %p210_p8 = scmp.ne.s32.totalorder %s332_s1, %s209_s28  ;;  %p213_p9 = scmp.lt.u32.totalorder %s209_s28, %s332_s1 }
  0x16   :  { %p215_p10 = pnand %p213_p9, %p210_p8 }
  0x18   :  { %218 = shalt.err (!%p215_p10)
}
  0x19   :  { %s219_s6 = scalar_lea.vmem %s285_s15, 2048  ;;  %p224_p12 = scmp.lt.s32.totalorder %s285_s15, %s285_s15 }
  0x1a   :  { %p220_p11 = scmp.ne.s32.totalorder %s285_s15, %s219_s6  ;;  %p225_p13 = scmp.lt.s32.totalorder %s219_s6, %s219_s6 }
  0x1c   :  { %p226_p0 = por %p225_p13, %p224_p12 }
  0x1e   :  { %p227_p1 = pnand %p226_p0, %p220_p11 }
  0x20   :  { %230 = shalt.err (!%p227_p1)
}
  0x21   :  { %s261_s0 = smov 256   ;;  %s262_s7 = smov 16  }
  0x22   :  { %32 = dma.hbm_to_vmem [thread:$0]  %s332_s1, 2048, %s285_s15, [#allocation6], %s261_s0, %s261_s0, %s262_s7  }
  0x23   :  { %253 = dma.done.wait [#allocation3], 128  }
  0x24   :  { %254 = vsyncadd [#allocation3], 4294967168 }
  0x25   :  { %255 = dma.done.wait [#allocation6], 2048  }
  0x26   :  { %256 = vsyncadd [#allocation6], 4294965248  ;;  %v263_v0 = vmov 0.0   ;;  %v43_v1 = vld [vmem:[#allocation5 + $0x8] sm:$0xff]  ;;  %v45_v2 = vld [vmem:[#allocation5 + $0x18] sm:$0xff]  ;;  %vm70_vm0 = vcmask 523264   ;;  %v60_v26 = vlaneseq }
  0x27   :  { %138 = vmatprep.mubr.f32.mxu0 %v263_v0  ;;  %v42_v3 = vld [vmem:[#allocation5] sm:$0xff]  ;;  %v165_v4 = vpack.c.bf16 %v45_v2, %v43_v1  ;;  %v44_v5 = vld [vmem:[#allocation5 + $0x10] sm:$0xff]  ;;  %v47_v6 = vld [vmem:[#allocation5 + $0x28] sm:$0xff]  ;;  %s264_s11 = smov [#allocation7]   ;;  %vm146_vm1 = vcmask 834560  }
  0x28   :  { %v49_v7 = vld [vmem:[#allocation5 + $0x38] sm:$0xff]  ;;  %v167_v8 = vpack.c.bf16 %v44_v5, %v42_v3  ;;  %v46_v10 = vld [vmem:[#allocation5 + $0x20] sm:$0xff]  ;;  %v48_v11 = vld [vmem:[#allocation5 + $0x30] sm:$0xff]  ;;  %v61_v27 = vshrl.u32 %v60_v26, 7  ;;  %s154_s12 = sshll.u32 %s264_s11, 4  ;;  %s155_s12 = int_to_ptr.vmem [resolvable:$true] %s154_s12 }
  0x29   :  { %v169_v9 = vpack.c.bf16 %v49_v7, %v47_v6  ;;  %v51_v12 = vld [vmem:[#allocation5 + $0x48] sm:$0xff]  ;;  %166 = vmatprep.subr.bf16.mxu0 %v165_v4  ;;  %v53_v13 = vld [vmem:[#allocation5 + $0x58] sm:$0xff]  ;;  %v171_v14 = vpack.c.bf16 %v48_v11, %v46_v10  ;;  %v50_v16 = vld [vmem:[#allocation5 + $0x40] sm:$0xff]  ;;  %s231_s13 = scalar_lea.vmem %s155_s12, 256  ;;  %p236_p3 = scmp.lt.s32.totalorder %s155_s12, %s155_s12 }
  0x2a   :  { %168 = vmatpush1.bf16.msra.mxu0 %v167_v8  ;;  %v173_v15 = vpack.c.bf16 %v53_v13, %v51_v12  ;;  %v52_v17 = vld [vmem:[#allocation5 + $0x50] sm:$0xff]  ;;  %v55_v18 = vld [vmem:[#allocation5 + $0x68] sm:$0xff]  ;;  %v57_v19 = vld [vmem:[#allocation5 + $0x78] sm:$0xff]  ;;  %v62_v28 = vsub.s32 0, %v61_v27  ;;  %v66_v30 = vsub.s32 1, %v61_v27  ;;  %p232_p2 = scmp.ne.s32.totalorder %s155_s12, %s231_s13  ;;  %p237_p4 = scmp.lt.s32.totalorder %s231_s13, %s231_s13 }
  0x2b   :  { %170 = vmatprep.subr.bf16.mxu0 %v169_v9  ;;  %v175_v20 = vpack.c.bf16 %v52_v17, %v50_v16  ;;  %v177_v21 = vpack.c.bf16 %v57_v19, %v55_v18  ;;  %v54_v22 = vld [vmem:[#allocation5 + $0x60] sm:$0xff]  ;;  %v56_v23 = vld [vmem:[#allocation5 + $0x70] sm:$0xff]  ;;  %v41_v25 = vld [vmem:[#allocation2] sm:$0xff] }
  0x2c   :  { %v179_v24 = vpack.c.bf16 %v56_v23, %v54_v22  ;;  %v58_v29 = vld [vmem:[%s333_s2] sm:$0x3]  ;;  %p238_p5 = por %p237_p4, %p236_p3 }
  0x2d   :  { %v63_v31 = vrot.slane %v58_v29, %v62_v28  ;;  %v67_v32 = vrot.slane %v58_v29, %v66_v30 }
  0x2e   :  { %172 = vmatpush1.bf16.msra.mxu0 %v171_v14  ;;  %p239_p6 = pnand %p238_p5, %p232_p2 }
  0x2f   :  { %174 = vmatprep.subr.bf16.mxu0 %v173_v15 }
  0x32   :  { %176 = vmatpush1.bf16.msra.mxu0 %v175_v20 }
  0x33   :  { %178 = vmatprep.subr.bf16.mxu0 %v177_v21 }
  0x36   :  { %180 = vmatpush1.bf16.msra.mxu0 %v179_v24 }
  0x39   :  { %164 = vmatmul.mubr.msk.f32.vlgmr.msra.gmra.mrb[0].mxu0 %vm70_vm0, %v41_v25 }
 0x10c   :  { %v140_v33 = vpop.f32.mrb[0].mxu0 }
 0x10d   :  { %v141_v34 = vadd.f32 %v140_v33, %v63_v31  ;;  %v142_v35 = vpop.f32.mrb[1].mxu0 }
 0x10e   :  { %v143_v36 = vadd.f32 %v142_v35, %v67_v32 }
 0x10f   :  { %145 = vst [vmem:[#allocation7] sm:$0xff] %v141_v34 }
 0x110   :  { %147 = vst.msk [vmem:[#allocation7 + $0x8] sm:$0xff] %vm146_vm1, %v143_v36 }
 0x111   :  { %242 = shalt.err (!%p239_p6)
}
 0x112   :  { %s243_s15 = scalar_lea.hbm %s334_s3, 256 }
 0x113   :  { %p244_p7 = scmp.ne.s32.totalorder %s334_s3, %s243_s15  ;;  %p247_p8 = scmp.lt.u32.totalorder %s243_s15, %s334_s3 }
 0x115   :  { %p249_p9 = pnand %p247_p8, %p244_p7 }
 0x117   :  { %252 = shalt.err (!%p249_p9)
}
 0x118   :  { %157 = dma.vmem_to_hbm [thread:$0]  %s155_s12, 256, %s334_s3, [#allocation4]  }
 0x119   :  { %257 = dma.done.wait [#allocation4], 256  }
 0x11a   :  { %258 = vsyncadd [#allocation4], 4294967040 }
 0x11b   :  { %161 = vsyncpa [#allocation3], 1 }
 0x11c   :  { %162 = vsyncpa [#allocation6], 1 }
 0x11d   :  { %163 = vsyncpa [#allocation4], 1 }

</bundles_post_ra>
